<compile_context>
chip_gen: v6e
topology: v6e:2x2x1
jax: 0.10.0
libtpu: 0.0.40
codegen_flags: <defaults>
</compile_context>

<pallas_src>
import functools

import jax
import jax.numpy as jnp
from jax import lax
from jax.experimental import pallas as pl
from jax.experimental.pallas import tpu as pltpu

_INV_SQRT2 = 0.7071067811865476
_GELU_TANH_C = 0.7978845608028654  # sqrt(2/pi)


def _gelu(h, approx):
    if approx:
        # tanh approximation -> goes to the otherwise-idle EUP slot.
        return 0.5 * h * (1.0 + jnp.tanh(_GELU_TANH_C * (h + 0.044715 * h * h * h)))
    # exact GELU (nn.GELU default approximate='none'): 0.5*x*(1+erf(x/sqrt(2)))
    return 0.5 * h * (1.0 + lax.erf(h * _INV_SQRT2))


def _mlp_kernel_f32_out(x_ref, w1_ref, b1_ref, w2_ref, b2_ref, o_ref, *, approx_gelu):
    """float32 output: accumulate fc2 partials directly into the resident output block."""
    k = pl.program_id(1)

    @pl.when(k == 0)
    def _init():
        # Start the accumulation from the fc2 bias (f32 output, no precision loss).
        o_ref[...] = jnp.broadcast_to(b2_ref[...].astype(jnp.float32), o_ref.shape)

    # fc1 partial: [tm, in_dim] @ [in_dim, tn_h] + b1 slice   (f32 accumulate)
    h = jnp.dot(x_ref[...], w1_ref[...], preferred_element_type=jnp.float32)
    h = _gelu(h + b1_ref[...].astype(jnp.float32), approx_gelu)
    # dropout1 / dropout2: eval-mode identity
    # fc2 partial: [tm, tn_h] @ [tn_h, out_dim] accumulated into the output block
    o_ref[...] += jnp.dot(h.astype(w2_ref.dtype), w2_ref[...],
                          preferred_element_type=jnp.float32)


def _mlp_kernel_scratch(x_ref, w1_ref, b1_ref, w2_ref, b2_ref, o_ref, acc_ref, *, approx_gelu):
    """Narrow output dtype (e.g. bf16): f32 scratch accumulator, cast on the last k step."""
    k = pl.program_id(1)

    @pl.when(k == 0)
    def _init():
        acc_ref[...] = jnp.zeros_like(acc_ref)

    h = jnp.dot(x_ref[...], w1_ref[...], preferred_element_type=jnp.float32)
    h = _gelu(h + b1_ref[...].astype(jnp.float32), approx_gelu)
    acc_ref[...] += jnp.dot(h.astype(w2_ref.dtype), w2_ref[...],
                            preferred_element_type=jnp.float32)

    @pl.when(k == pl.num_programs(1) - 1)
    def _finalize():
        o_ref[...] = (acc_ref[...] + b2_ref[...].astype(jnp.float32)).astype(o_ref.dtype)


def pad_mlp_params(w1, b1, w2, tn_h=512):
    """One-time (outside jit, at parameter init) zero-pad of mlp_dim to a multiple of tn_h.

    GELU(x @ 0 + 0) = 0 contributes exactly 0 through fc2, so results are unchanged.
    Never call this per forward pass (it materializes a full HBM copy of the weights).
    """
    mlp_dim = w1.shape[1]
    pad = (-mlp_dim) % tn_h
    if pad:
        w1 = jnp.pad(w1, ((0, 0), (0, pad)))
        b1 = jnp.pad(b1, ((0, 0), (0, pad)))
        w2 = jnp.pad(w2, ((0, pad), (0, 0)))
    return w1, b1, w2


def _vmem_budget_bytes():
    phys = 64 * 1024 * 1024  # conservative fallback (v7x per-TC VMEM)
    try:
        phys = int(getattr(pltpu.get_tpu_info(), "vmem_capacity_bytes", phys))
    except Exception:
        pass
    # ~15% headroom for compiler-internal scratch / semaphores.
    return int(phys * 0.85)


def _pick_tn_h(mlp_dim, tn_h):
    if tn_h is not None:
        if mlp_dim % tn_h:
            raise ValueError("tn_h must divide mlp_dim (use pad_mlp_params once at init).")
        return tn_h
    if mlp_dim <= 512:
        return mlp_dim  # single k step; block == full array dim is always legal
    for cand in (512, 384, 256, 128):  # multiples of 128 (lane-aligned)
        if mlp_dim % cand == 0:
            return cand
    raise ValueError(
        f"mlp_dim={mlp_dim} is not a multiple of 128; pad once with pad_mlp_params() "
        "at parameter-init time (per-call padding wastes HBM bandwidth).")


def _fit_vmem(tm, tn_h, in_dim, out_dim, in_bytes, w_bytes, out_bytes, use_scratch, budget):
    def footprint(tm_, tn_):
        return (1 * tm_ * in_dim * in_bytes            # x row tile: Buffered(1)
                + 2 * in_dim * tn_ * w_bytes           # w1 column block (double-buffered)
                + 2 * tn_ * w_bytes                    # b1 slice
                + 2 * tn_ * out_dim * w_bytes          # w2 row block (double-buffered)
                + 1 * out_dim * w_bytes                # b2: Buffered(1)
                + 2 * tm_ * out_dim * out_bytes        # output block
                + (tm_ * out_dim * 4 if use_scratch else 0))
    # Shrink tn_h first (DMA granularity only), then tm (weight-reuse intensity).
    while footprint(tm, tn_h) > budget and tn_h > 128 and tn_h % 256 == 0:
        tn_h //= 2
    while footprint(tm, tn_h) > budget and tm > 128:
        tm = max(128, tm // 2)
    return tm, tn_h


@functools.partial(jax.jit, static_argnames=("tm", "tn_h", "approx_gelu"))
def mlp_block(x, w1, b1, w2, b2, *, tm=None, tn_h=None, approx_gelu=False):
    """x: [M, in_dim]; w1: [in_dim, mlp_dim]; b1: [1, mlp_dim];
    w2: [mlp_dim, out_dim]; b2: [1, out_dim]."""
    M, in_dim = x.shape
    mlp_dim = w1.shape[1]
    out_dim = w2.shape[1]
    out_dtype = x.dtype
    use_scratch = out_dtype != jnp.float32

    # --- hidden tile: stream mlp_dim as a reduction ("arbitrary") axis.
    tn_h = _pick_tn_h(mlp_dim, tn_h)

    # --- row tile: large enough that the streamed weight blocks are amortized
    #     (arithmetic intensity ~ 2*tm/itemsize flop/byte above the crossover).
    if tm is None:
        tm = 1024 if x.dtype == jnp.bfloat16 else 512
    tm = min(tm, M)
    # Megacore (v7x): keep at least 2 row tiles on the parallel axis when M permits.
    if M >= 256:
        while pl.cdiv(M, tm) < 2 and tm > 128:
            tm //= 2

    # --- generation-aware VMEM budget; shrink tn_h before tm if needed.
    budget = _vmem_budget_bytes()
    tm, tn_h = _fit_vmem(tm, tn_h, in_dim, out_dim,
                         x.dtype.itemsize, w1.dtype.itemsize, out_dtype.itemsize,
                         use_scratch, budget)

    k_steps = mlp_dim // tn_h
    m_tiles = pl.cdiv(M, tm)
    grid = (m_tiles, k_steps)

    in_bytes, w_bytes = x.dtype.itemsize, w1.dtype.itemsize
    cost = pl.CostEstimate(
        flops=2 * M * mlp_dim * (in_dim + out_dim),
        transcendentals=M * mlp_dim,  # erf / tanh
        # Weights are re-streamed once per row tile.
        bytes_accessed=(M * in_dim * in_bytes
                        + m_tiles * (in_dim * mlp_dim + mlp_dim + mlp_dim * out_dim) * w_bytes
                        + out_dim * w_bytes
                        + M * out_dim * out_dtype.itemsize),
    )

    in_specs = [
        pl.BlockSpec((tm, in_dim), lambda i, k: (i, 0),
                     pipeline_mode=pl.Buffered(1)),          # x row tile (k-invariant)
        pl.BlockSpec((in_dim, tn_h), lambda i, k: (0, k)),   # w1 column block
        pl.BlockSpec((1, tn_h), lambda i, k: (0, k)),        # b1 slice
        pl.BlockSpec((tn_h, out_dim), lambda i, k: (k, 0)),  # w2 row block
        pl.BlockSpec((1, out_dim), lambda i, k: (0, 0),
                     pipeline_mode=pl.Buffered(1)),          # b2 (constant)
    ]

    if use_scratch:
        kernel = functools.partial(_mlp_kernel_scratch, approx_gelu=approx_gelu)
        scratch_shapes = [pltpu.VMEM((tm, out_dim), jnp.float32)]
    else:
        kernel = functools.partial(_mlp_kernel_f32_out, approx_gelu=approx_gelu)
        scratch_shapes = []

    return pl.pallas_call(
        kernel,
        out_shape=jax.ShapeDtypeStruct((M, out_dim), out_dtype),
        grid_spec=pltpu.PrefetchScalarGridSpec(
            num_scalar_prefetch=0,
            grid=grid,
            in_specs=in_specs,
            out_specs=pl.BlockSpec((tm, out_dim), lambda i, k: (i, 0)),
            scratch_shapes=scratch_shapes,
        ),
        compiler_params=pltpu.CompilerParams(
            dimension_semantics=("parallel", "arbitrary"),
            vmem_limit_bytes=budget,
        ),
        cost_estimate=cost,
    )(x, w1, b1, w2, b2)


if __name__ == "__main__":
    # Small shapes implied by the module (tokens x features through two Linears).
    batch, seq = 2, 8
    in_dim, mlp_dim, out_dim = 32, 64, 32
    dropout_rate = 0.1  # > 0 so both dropouts exist in the module; eval-mode identity here.

    key = jax.random.PRNGKey(0)
    kx, kw1, kb1, kw2, kb2 = jax.random.split(key, 5)

    x = jax.random.normal(kx, (batch, seq, in_dim), dtype=jnp.float32)
    # Parameters stored pre-transposed: w1 [in_dim, mlp_dim], w2 [mlp_dim, out_dim].
    w1 = jax.random.normal(kw1, (in_dim, mlp_dim), dtype=jnp.float32) * 0.02
    b1 = jax.random.normal(kb1, (1, mlp_dim), dtype=jnp.float32) * 0.02
    w2 = jax.random.normal(kw2, (mlp_dim, out_dim), dtype=jnp.float32) * 0.02
    b2 = jax.random.normal(kb2, (1, out_dim), dtype=jnp.float32) * 0.02

    # Glue: flatten (batch, seq) -> M rows for the kernel; reshape back after.
    x2d = x.reshape(batch * seq, in_dim)
    out2d = mlp_block(x2d, w1, b1, w2, b2)
    out = out2d.reshape(batch, seq, out_dim)
    jax.block_until_ready(out)

    # Pure-JAX reference (exact GELU, eval-mode dropout == identity).
    h_ref = x2d @ w1 + b1
    h_ref = 0.5 * h_ref * (1.0 + lax.erf(h_ref / jnp.sqrt(2.0)))
    ref = (h_ref @ w2 + b2).reshape(batch, seq, out_dim)
    assert jnp.allclose(out, ref, atol=1e-5, rtol=1e-5), "mismatch vs reference"

    print("KERNEL_OK")
</pallas_src>

<mosaic_0001>
module attributes {stable_mosaic.version = 11 : i64} {
  func.func @_mlp_kernel_f32_out(%arg0: i32, %arg1: i32, %arg2: memref<16x32xf32, #tpu.memory_space<vmem>>, %arg3: memref<32x64xf32, #tpu.memory_space<vmem>>, %arg4: memref<1x64xf32, #tpu.memory_space<vmem>>, %arg5: memref<64x32xf32, #tpu.memory_space<vmem>>, %arg6: memref<1x32xf32, #tpu.memory_space<vmem>>, %arg7: memref<16x32xf32, #tpu.memory_space<vmem>>) attributes {dimension_semantics = [#tpu.dimension_semantics<parallel>, #tpu.dimension_semantics<arbitrary>], iteration_bounds = array<i64: 1, 1>, scalar_prefetch = 0 : i64, scratch_operands = 0 : i64, tpu.core_type = #tpu.core_type<tc>, window_params = [{pipeline_mode = #tpu.pipeline_mode<synchronous>, transform_indices = @transform_0, window_bounds = array<i64: 16, 32>}, {transform_indices = @transform_1, window_bounds = array<i64: 32, 64>}, {transform_indices = @transform_2, window_bounds = array<i64: 1, 64>}, {transform_indices = @transform_3, window_bounds = array<i64: 64, 32>}, {pipeline_mode = #tpu.pipeline_mode<synchronous>, transform_indices = @transform_4, window_bounds = array<i64: 1, 32>}, {transform_indices = @transform_5, window_bounds = array<i64: 16, 32>}]} {
    %c0_i32 = arith.constant 0 : i32
    %0 = arith.cmpi eq, %arg1, %c0_i32 : i32
    %1 = arith.extui %0 : i1 to i32
    %c0_i32_0 = arith.constant 0 : i32
    %2 = arith.cmpi ne, %1, %c0_i32_0 : i32
    scf.if %2 {
      %c0_16 = arith.constant 0 : index
      %c0_17 = arith.constant 0 : index
      %22 = vector.load %arg6[%c0_16, %c0_17] : memref<1x32xf32, #tpu.memory_space<vmem>>, vector<1x32xf32>
      %23 = vector.shape_cast %22 : vector<1x32xf32> to vector<1x32xf32>
      %24 = vector.broadcast %23 : vector<1x32xf32> to vector<16x32xf32>
      %c0_18 = arith.constant 0 : index
      %c0_19 = arith.constant 0 : index
      %25 = vector.load %arg7[%c0_18, %c0_19] : memref<16x32xf32, #tpu.memory_space<vmem>>, vector<16x32xf32>
      tpu.vector_store %arg7[%c0_18, %c0_19], %24 {strides = array<i32>} : memref<16x32xf32, #tpu.memory_space<vmem>>, vector<16x32xf32>,
    } else {
    }
    %c0 = arith.constant 0 : index
    %c0_1 = arith.constant 0 : index
    %3 = vector.load %arg2[%c0, %c0_1] : memref<16x32xf32, #tpu.memory_space<vmem>>, vector<16x32xf32>
    %c0_2 = arith.constant 0 : index
    %c0_3 = arith.constant 0 : index
    %4 = vector.load %arg3[%c0_2, %c0_3] : memref<32x64xf32, #tpu.memory_space<vmem>>, vector<32x64xf32>
    %cst = arith.constant dense<0.000000e+00> : vector<16x64xf32>
    %5 = tpu.matmul %3, %4, %cst {dimension_numbers = #tpu.dot_dimension_numbers<[1], [0], [0], [1], [0, 0, 1, 1], [], []>} : vector<16x32xf32>, vector<32x64xf32>, vector<16x64xf32> -> vector<16x64xf32>
    %c0_4 = arith.constant 0 : index
    %c0_5 = arith.constant 0 : index
    %6 = vector.load %arg4[%c0_4, %c0_5] : memref<1x64xf32, #tpu.memory_space<vmem>>, vector<1x64xf32>
    %7 = vector.broadcast %6 : vector<1x64xf32> to vector<16x64xf32>
    %8 = arith.addf %5, %7 : vector<16x64xf32>
    %cst_6 = arith.constant 5.000000e-01 : f32
    %9 = vector.broadcast %cst_6 : f32 to vector<16x64xf32>
    %10 = arith.mulf %9, %8 : vector<16x64xf32>
    %cst_7 = arith.constant 0.707106769 : f32
    %11 = vector.broadcast %cst_7 : f32 to vector<16x64xf32>
    %12 = arith.mulf %8, %11 : vector<16x64xf32>
    %13 = math.erf %12 : vector<16x64xf32>
    %cst_8 = arith.constant 1.000000e+00 : f32
    %14 = vector.broadcast %cst_8 : f32 to vector<16x64xf32>
    %15 = arith.addf %14, %13 : vector<16x64xf32>
    %16 = arith.mulf %10, %15 : vector<16x64xf32>
    %c0_9 = arith.constant 0 : index
    %c0_10 = arith.constant 0 : index
    %17 = vector.load %arg7[%c0_9, %c0_10] : memref<16x32xf32, #tpu.memory_space<vmem>>, vector<16x32xf32>
    %c0_11 = arith.constant 0 : index
    %c0_12 = arith.constant 0 : index
    %18 = vector.load %arg5[%c0_11, %c0_12] : memref<64x32xf32, #tpu.memory_space<vmem>>, vector<64x32xf32>
    %cst_13 = arith.constant dense<0.000000e+00> : vector<16x32xf32>
    %19 = tpu.matmul %16, %18, %cst_13 {dimension_numbers = #tpu.dot_dimension_numbers<[1], [0], [0], [1], [0, 0, 1, 1], [], []>} : vector<16x64xf32>, vector<64x32xf32>, vector<16x32xf32> -> vector<16x32xf32>
    %20 = arith.addf %17, %19 : vector<16x32xf32>
    %c0_14 = arith.constant 0 : index
    %c0_15 = arith.constant 0 : index
    %21 = vector.load %arg7[%c0_14, %c0_15] : memref<16x32xf32, #tpu.memory_space<vmem>>, vector<16x32xf32>
    tpu.vector_store %arg7[%c0_14, %c0_15], %20 {strides = array<i32>} : memref<16x32xf32, #tpu.memory_space<vmem>>, vector<16x32xf32>,
    return
  }
  func.func @transform_0(%arg0: i32, %arg1: i32) -> (i32, i32) {
    %c0_i32 = arith.constant 0 : i32
    %c0_i32_0 = arith.constant 0 : i32
    return %arg0, %c0_i32 : i32, i32
  }
  func.func @transform_1(%arg0: i32, %arg1: i32) -> (i32, i32) {
    %c0_i32 = arith.constant 0 : i32
    %c0_i32_0 = arith.constant 0 : i32
    return %c0_i32, %arg1 : i32, i32
  }
  func.func @transform_2(%arg0: i32, %arg1: i32) -> (i32, i32) {
    %c0_i32 = arith.constant 0 : i32
    %c0_i32_0 = arith.constant 0 : i32
    return %c0_i32, %arg1 : i32, i32
  }
  func.func @transform_3(%arg0: i32, %arg1: i32) -> (i32, i32) {
    %c0_i32 = arith.constant 0 : i32
    %c0_i32_0 = arith.constant 0 : i32
    return %arg1, %c0_i32 : i32, i32
  }
  func.func @transform_4(%arg0: i32, %arg1: i32) -> (i32, i32) {
    %c0_i32 = arith.constant 0 : i32
    %c0_i32_0 = arith.constant 0 : i32
    %c0_i32_1 = arith.constant 0 : i32
    return %c0_i32, %c0_i32_0 : i32, i32
  }
  func.func @transform_5(%arg0: i32, %arg1: i32) -> (i32, i32) {
    %c0_i32 = arith.constant 0 : i32
    %c0_i32_0 = arith.constant 0 : i32
    return %arg0, %c0_i32 : i32, i32
  }
}

</mosaic_0001>

<bundles_post_ra>
// kernel: mlp_block.1
= control target key start
LH: loop header
LB: loop body
LE: loop exit
PB: predicated region body
PF: predicated region fallthrough
CT: control target
= control target key end

     0   :  { %vm32_vm0 = vcmask 261120   ;;  %s423_s0 = inlined_call_operand.vmem [shape: f32[16,32], index: 0, kind: input, shape index: {}]   ;;  %s424_s1 = inlined_call_operand.vmem [shape: f32[32,64], index: 1, kind: input, shape index: {}]   ;;  %s425_s2 = inlined_call_operand.vmem [shape: f32[1,64], index: 2, kind: input, shape index: {}]   ;;  %s426_s3 = inlined_call_operand.vmem [shape: f32[64,32], index: 3, kind: input, shape index: {}]   ;;  %s427_s4 = inlined_call_operand.vmem [shape: f32[1,32], index: 4, kind: input, shape index: {}]   ;;  %s428_s5 = inlined_call_operand.hbm [shape: f32[16,32], index: 5, kind: output, shape index: {}]  }
   0x1   :  { %v40_v0 = vld [vmem:[%s424_s1 + $0x18] sm:$0xff]  ;;  %v39_v1 = vld [vmem:[%s424_s1 + $0x10] sm:$0xff]  ;;  %v35_v2 = vld [vmem:[%s423_s0] sm:$0xff] }
   0x2   :  { %274 = vmatprep.subr.mxu0 %v40_v0  ;;  %v38_v3 = vld [vmem:[%s424_s1 + $0x8] sm:$0xff]  ;;  %282 = vmatprep.mubr.msk.f32.mxu0 %vm32_vm0, %v35_v2 }
   0x3   :  { %275 = vmatpush3.msra.mxu0 %v40_v0 }
   0x4   :  { %10 = vsyncpa [#allocation3], 0  ;;  %276 = vmatprep.subr.mxu0 %v39_v1  ;;  %v37_v4 = vld [vmem:[%s424_s1] sm:$0xff]  ;;  %v36_v5 = vld [vmem:[%s423_s0 + $0x8] sm:$0xff]  ;;  %vm150_vm1 = vcmask 523264  }
   0x5   :  { %277 = vmatpush3.msra.mxu0 %v39_v1  ;;  %v149_v6 = vld [vmem:[%s426_s3 + $0x38] sm:$0xff]  ;;  %v148_v7 = vld [vmem:[%s426_s3 + $0x30] sm:$0xff]  ;;  %v147_v8 = vld [vmem:[%s426_s3 + $0x28] sm:$0xff] }
   0x6   :  { %278 = vmatprep.subr.mxu0 %v38_v3  ;;  %285 = vmatprep.subr.mxu1 %v149_v6  ;;  %v146_v9 = vld [vmem:[%s426_s3 + $0x20] sm:$0xff]  ;;  %v145_v10 = vld [vmem:[%s426_s3 + $0x18] sm:$0xff]  ;;  %v144_v11 = vld [vmem:[%s426_s3 + $0x10] sm:$0xff] }
   0x7   :  { %279 = vmatpush3.msra.mxu0 %v38_v3  ;;  %286 = vmatpush3.msra.mxu1 %v149_v6  ;;  %v143_v12 = vld [vmem:[%s426_s3 + $0x8] sm:$0xff]  ;;  %v142_v13 = vld [vmem:[%s426_s3] sm:$0xff] }
   0x8   :  { %280 = vmatprep.subr.mxu0 %v37_v4  ;;  %287 = vmatprep.subr.mxu1 %v148_v7  ;;  %v252_v14 = vld [vmem:[%s427_s4] ss:$0 sm:$0xff] }
   0x9   :  { %281 = vmatpush3.msra.mxu0 %v37_v4  ;;  %288 = vmatpush3.msra.mxu1 %v148_v7  ;;  %34 = vst.msk [vmem:[#allocation2 + $0x8] sm:$0xff] %vm32_vm0, %v252_v14  ;;  %33 = vst.msk [vmem:[#allocation2] sm:$0xff] %vm32_vm0, %v252_v14  ;;  %v253_v15 = vld [vmem:[%s425_s2] ss:$0 sm:$0xff]  ;;  %s333_s2 = smov [#allocation2]  }
   0xa   :  { %283 = vmatmul.mubr.msk.f32.vlgmr.msra.gmra.mxu0 %vm32_vm0, %v36_v5  ;;  %289 = vmatprep.subr.mxu1 %v147_v8  ;;  %s241_s3 = sshll.u32 %s333_s2, 4  ;;  %s242_s3 = int_to_ptr.vmem [resolvable:$true] %s241_s3 }
   0xb   :  { %290 = vmatpush3.msra.mxu1 %v147_v8  ;;  %s311_s4 = scalar_lea.vmem %s242_s3, 256  ;;  %p316_p1 = scmp.lt.s32.totalorder %s242_s3, %s242_s3 }
   0xc   :  { %291 = vmatprep.subr.mxu1 %v146_v9  ;;  %p312_p0 = scmp.ne.s32.totalorder %s242_s3, %s311_s4  ;;  %p317_p2 = scmp.lt.s32.totalorder %s311_s4, %s311_s4 }
   0xd   :  { %292 = vmatpush3.msra.mxu1 %v146_v9 }
   0xe   :  { %293 = vmatprep.subr.mxu1 %v145_v10  ;;  %p318_p3 = por %p317_p2, %p316_p1 }
   0xf   :  { %294 = vmatpush3.msra.mxu1 %v145_v10 }
  0x10   :  { %295 = vmatprep.subr.mxu1 %v144_v11  ;;  %v141_v30 = vld [vmem:[#allocation2 + $0x8] sm:$0xff]  ;;  %v140_v32 = vld [vmem:[#allocation2] sm:$0xff]  ;;  %p319_p4 = pnand %p318_p3, %p312_p0 }
  0x11   :  { %296 = vmatpush3.msra.mxu1 %v144_v11 }
  0x12   :  { %297 = vmatprep.subr.mxu1 %v143_v12 }
  0x13   :  { %298 = vmatpush3.msra.mxu1 %v143_v12 }
  0x14   :  { %299 = vmatprep.subr.mxu1 %v142_v13 }
  0x15   :  { %300 = vmatpush3.msra.mxu1 %v142_v13 }
  0xca   :  { %v284_v16 = vpop.f32.mrf.mxu0 }
  0xcb   :  { %v127_v17 = vadd.f32 %v284_v16, %v253_v15 }
  0xcc   :  { %v121_v18 = vpop.f32.mrf.mxu0 }
  0xcd   :  { %v133_v19 = vmul.f32 0.70710677, %v127_v17  ;;  %v122_v20 = vadd.f32 %v253_v15, %v121_v18  ;;  %v131_v27 = vmul.f32 0.5, %v127_v17 }
  0xcf   :  { %307 = verf.f32 %v133_v19  ;;  %v132_v21 = vmul.f32 0.70710677, %v122_v20  ;;  %v130_v25 = vmul.f32 0.5, %v122_v20 }
  0xd1   :  { %309 = verf.f32 %v132_v21 }
  0xdc   :  { %v308_v22 = vpop.eup %307 }
  0xdd   :  { %v137_v24 = vadd.f32 1.0, %v308_v22 }
  0xde   :  { %v310_v23 = vpop.eup %309 }
  0xdf   :  { %v136_v26 = vadd.f32 1.0, %v310_v23  ;;  %v139_v29 = vmul.f32 %v137_v24, %v131_v27 }
  0xe1   :  { %v138_v28 = vmul.f32 %v136_v26, %v130_v25 }
  0xe3   :  { %301 = vmatprep.mubr.msk.f32.mxu1 %vm150_vm1, %v138_v28 }
  0xe4   :  { %302 = vmatmul.mubr.msk.f32.vlgmr.msra.gmra.mxu1 %vm150_vm1, %v139_v29 }
 0x1a4   :  { %v303_v31 = vpop.f32.mrf.mxu1 }
 0x1a5   :  { %v233_v33 = vadd.f32 %v303_v31, %v141_v30 }
 0x1a6   :  { %v223_v34 = vpop.f32.mrf.mxu1 }
 0x1a7   :  { %235 = vst.msk [vmem:[#allocation2 + $0x8] sm:$0xff] %vm32_vm0, %v233_v33  ;;  %v232_v35 = vadd.f32 %v223_v34, %v140_v32 }
 0x1a9   :  { %234 = vst.msk [vmem:[#allocation2] sm:$0xff] %vm32_vm0, %v232_v35 }
 0x1aa   :  { %322 = shalt.err (!%p319_p4)
}
 0x1ab   :  { %s334_s23 = smov 128   ;;  %s335_s24 = smov 8  }
 0x1ac   :  { %247 = dma.vmem_to_hbm [thread:$0]  %s242_s3, 256, %s428_s5, [#allocation3], %s334_s23, %s334_s23, %s335_s24  }
 0x1ad   :  { %331 = dma.done.wait [#allocation3], 256  }
 0x1ae   :  { %332 = vsyncadd [#allocation3], 4294967040 }
 0x1af   :  { %251 = vsyncpa [#allocation3], 1 }

</bundles_post_ra>
